<compile_context>
chip_gen: v7x
topology: tpu7x:2x2x1
jax: 0.10.0
libtpu: 0.0.40
codegen_flags: <defaults>
</compile_context>

<pallas_src>
import jax
import jax.numpy as jnp
from jax.experimental import pallas as pl
from jax.experimental.pallas import tpu as pltpu


def rnn_kernel(x_ref, len_ref,
               wih0_ref, whh0_ref, rb0_ref,      # layer 0: input W, recurrent W, summed bias
               w1cat_ref, rb1_ref,               # layer 1: [wih1; whh1], summed bias
               wfc1_ref, bfc1_ref,               # fc1
               wfc2_ref, bfc2_ref,               # fc2 (lane-padded)
               out_ref):
    """Single-invocation kernel: full 2-layer tanh RNN + gather + MLP head."""
    T, B, E = x_ref.shape
    H = whh0_ref.shape[0]

    # ---- hoisted, time-invariant work ------------------------------------
    # Layer-0 input projection for all timesteps at once (big M = T*B for the
    # MXU) plus the pre-summed layer-0 bias; removes one dependent matmul and
    # two bias adds per step from the serial recurrence.
    xw0 = jnp.dot(x_ref[...].reshape(T * B, E), wih0_ref[...],
                  preferred_element_type=jnp.float32) + rb0_ref[...]
    xw0 = xw0.reshape(T, B, H)

    whh0 = whh0_ref[...]                               # (H, H)
    w1cat = w1cat_ref[...]                             # (2H, H) = [wih1; whh1]
    rb1 = jnp.broadcast_to(rb1_ref[...], (B, H))       # broadcast once, not per step
    tlast = len_ref[...] - 1                           # (B, 1), hoisted

    h1 = jnp.zeros((B, H), jnp.float32)
    h2 = jnp.zeros((B, H), jnp.float32)
    last = jnp.zeros((B, H), jnp.float32)

    # ---- fully-unrolled serial recurrence --------------------------------
    # T is static and small; full unroll gives the scheduler cross-iteration
    # visibility to hide MXU result latency.
    for t in range(T):
        h1 = jnp.tanh(
            xw0[t]
            + jnp.dot(h1, whh0, preferred_element_type=jnp.float32))
        h2 = jnp.tanh(
            jnp.dot(jnp.concatenate([h1, h2], axis=-1), w1cat,
                    preferred_element_type=jnp.float32) + rb1)
        # capture hidden state at the last valid timestep of each sequence
        last = jnp.where(tlast == t, h2, last)

    # ---- fc1 -> ReLU -> fc2 ----------------------------------------------
    hidden = jnp.maximum(
        jnp.dot(last, wfc1_ref[...], preferred_element_type=jnp.float32)
        + bfc1_ref[...], 0.0)
    out = jnp.dot(hidden, wfc2_ref[...], preferred_element_type=jnp.float32) \
          + bfc2_ref[...]
    out_ref[...] = out.astype(out_ref.dtype)


def rnn_forward(x, lengths, params, *, num_classes):
    """x: (B, T, E) float32, lengths: (B,) int32. Returns (B, num_classes)."""
    B, T, E = x.shape
    H = params['whh0'].shape[0]

    # Pad batch to a multiple of 8 (sublane width): full-width vregs / MXU M.
    B_pad = ((B + 7) // 8) * 8
    # Pad the output class dim to a full 128-lane store (unmasked vst).
    C_pad = ((num_classes + 127) // 128) * 128

    x_p = jnp.zeros((B_pad, T, E), x.dtype).at[:B].set(x)
    len_p = jnp.ones((B_pad,), jnp.int32).at[:B].set(lengths.astype(jnp.int32))

    x_tbe = jnp.transpose(x_p, (1, 0, 2))              # time-major (T, B, E)
    len2d = len_p.reshape(B_pad, 1)

    # Pre-fused weights / biases (one-time XLA work outside the kernel).
    rb0 = params['bih0'] + params['bhh0']                               # (1, H)
    rb1 = params['bih1'] + params['bhh1']                               # (1, H)
    w1cat = jnp.concatenate([params['wih1'], params['whh1']], axis=0)   # (2H, H)
    w2p = jnp.zeros((H, C_pad), jnp.float32).at[:, :num_classes].set(params['w2'])
    b2p = jnp.zeros((1, C_pad), jnp.float32).at[:, :num_classes].set(params['b2'])

    vmem = pl.BlockSpec(memory_space=pltpu.MemorySpace.VMEM)
    call = pl.pallas_call(
        rnn_kernel,
        out_shape=jax.ShapeDtypeStruct((B_pad, C_pad), jnp.float32),
        in_specs=[vmem] * 11,
        out_specs=vmem,
    )
    out = call(x_tbe, len2d,
               params['wih0'], params['whh0'], rb0,
               w1cat, rb1,
               params['w1'], params['b1'], w2p, b2p)
    return out[:B, :num_classes]


def ref_forward(x, lengths, params):
    """Pure-JAX reference with the original (unfused) math for sanity checking."""
    B, T, E = x.shape
    H = params['whh0'].shape[0]
    h1 = jnp.zeros((B, H), jnp.float32)
    h2 = jnp.zeros((B, H), jnp.float32)
    last = jnp.zeros((B, H), jnp.float32)
    for t in range(T):
        xt = x[:, t, :]
        h1 = jnp.tanh(xt @ params['wih0'] + params['bih0']
                      + h1 @ params['whh0'] + params['bhh0'])
        h2 = jnp.tanh(h1 @ params['wih1'] + params['bih1']
                      + h2 @ params['whh1'] + params['bhh1'])
        is_last = (lengths.reshape(B, 1) - 1) == t
        last = jnp.where(is_last, h2, last)
    hidden = jnp.maximum(last @ params['w1'] + params['b1'], 0.0)
    return hidden @ params['w2'] + params['b2']


def init_params(key, embedding_dim, hidden_size, num_classes):
    """PyTorch-style uniform(-k, k) init; weights stored transposed (in, out)."""
    H, E, C = hidden_size, embedding_dim, num_classes
    ks = jax.random.split(key, 12)
    k_rnn = 1.0 / jnp.sqrt(H)
    k_fc1 = 1.0 / jnp.sqrt(H)
    k_fc2 = 1.0 / jnp.sqrt(H)
    u = lambda k, shape, bound: jax.random.uniform(
        k, shape, jnp.float32, -bound, bound)
    return {
        'wih0': u(ks[0], (E, H), k_rnn),
        'whh0': u(ks[1], (H, H), k_rnn),
        'bih0': u(ks[2], (1, H), k_rnn),
        'bhh0': u(ks[3], (1, H), k_rnn),
        'wih1': u(ks[4], (H, H), k_rnn),
        'whh1': u(ks[5], (H, H), k_rnn),
        'bih1': u(ks[6], (1, H), k_rnn),
        'bhh1': u(ks[7], (1, H), k_rnn),
        'w1':   u(ks[8], (H, H), k_fc1),
        'b1':   u(ks[9], (1, H), k_fc1),
        'w2':   u(ks[10], (H, C), k_fc2),
        'b2':   u(ks[11], (1, C), k_fc2),
    }


if __name__ == "__main__":
    B, T, E, H, C = 2, 8, 32, 32, 1

    key = jax.random.PRNGKey(0)
    k_x, k_p = jax.random.split(key)
    x = jax.random.normal(k_x, (B, T, E), jnp.float32)
    lengths = jnp.array([8, 5], jnp.int32)
    params = init_params(k_p, E, H, C)

    out = rnn_forward(x, lengths, params, num_classes=C)
    out = jax.block_until_ready(out)

    ref = ref_forward(x, lengths, params)
    assert out.shape == (B, C)
    assert jnp.allclose(out, ref, atol=1e-5, rtol=1e-5), (out, ref)

    print("KERNEL_OK")
</pallas_src>

<mosaic_0001>
module attributes {stable_mosaic.version = 11 : i64} {
  func.func @rnn_kernel(%arg0: memref<8x8x32xf32, #tpu.memory_space<vmem>>, %arg1: memref<8x1xi32, #tpu.memory_space<vmem>>, %arg2: memref<32x32xf32, #tpu.memory_space<vmem>>, %arg3: memref<32x32xf32, #tpu.memory_space<vmem>>, %arg4: memref<1x32xf32, #tpu.memory_space<vmem>>, %arg5: memref<64x32xf32, #tpu.memory_space<vmem>>, %arg6: memref<1x32xf32, #tpu.memory_space<vmem>>, %arg7: memref<32x32xf32, #tpu.memory_space<vmem>>, %arg8: memref<1x32xf32, #tpu.memory_space<vmem>>, %arg9: memref<32x128xf32, #tpu.memory_space<vmem>>, %arg10: memref<1x128xf32, #tpu.memory_space<vmem>>, %arg11: memref<8x128xf32, #tpu.memory_space<vmem>>) attributes {dimension_semantics = [], scalar_prefetch = 0 : i64, scratch_operands = 0 : i64, tpu.core_type = #tpu.core_type<tc>} {
    %c0 = arith.constant 0 : index
    %c0_0 = arith.constant 0 : index
    %c0_1 = arith.constant 0 : index
    %0 = vector.load %arg0[%c0, %c0_0, %c0_1] : memref<8x8x32xf32, #tpu.memory_space<vmem>>, vector<8x8x32xf32>
    %1 = vector.shape_cast %0 : vector<8x8x32xf32> to vector<64x32xf32>
    %c0_2 = arith.constant 0 : index
    %c0_3 = arith.constant 0 : index
    %2 = vector.load %arg2[%c0_2, %c0_3] : memref<32x32xf32, #tpu.memory_space<vmem>>, vector<32x32xf32>
    %cst = arith.constant dense<0.000000e+00> : vector<64x32xf32>
    %3 = tpu.matmul %1, %2, %cst {dimension_numbers = #tpu.dot_dimension_numbers<[1], [0], [0], [1], [0, 0, 1, 1], [], []>} : vector<64x32xf32>, vector<32x32xf32>, vector<64x32xf32> -> vector<64x32xf32>
    %c0_4 = arith.constant 0 : index
    %c0_5 = arith.constant 0 : index
    %4 = vector.load %arg4[%c0_4, %c0_5] : memref<1x32xf32, #tpu.memory_space<vmem>>, vector<1x32xf32>
    %5 = vector.broadcast %4 : vector<1x32xf32> to vector<64x32xf32>
    %6 = arith.addf %3, %5 : vector<64x32xf32>
    %7 = vector.shape_cast %6 : vector<64x32xf32> to vector<8x8x32xf32>
    %c0_6 = arith.constant 0 : index
    %c0_7 = arith.constant 0 : index
    %8 = vector.load %arg3[%c0_6, %c0_7] : memref<32x32xf32, #tpu.memory_space<vmem>>, vector<32x32xf32>
    %c0_8 = arith.constant 0 : index
    %c0_9 = arith.constant 0 : index
    %9 = vector.load %arg5[%c0_8, %c0_9] : memref<64x32xf32, #tpu.memory_space<vmem>>, vector<64x32xf32>
    %c0_10 = arith.constant 0 : index
    %c0_11 = arith.constant 0 : index
    %10 = vector.load %arg6[%c0_10, %c0_11] : memref<1x32xf32, #tpu.memory_space<vmem>>, vector<1x32xf32>
    %11 = vector.shape_cast %10 : vector<1x32xf32> to vector<1x32xf32>
    %12 = vector.broadcast %11 : vector<1x32xf32> to vector<8x32xf32>
    %c0_12 = arith.constant 0 : index
    %c0_13 = arith.constant 0 : index
    %13 = vector.load %arg1[%c0_12, %c0_13] : memref<8x1xi32, #tpu.memory_space<vmem>>, vector<8x1xi32>
    %c1_i32 = arith.constant 1 : i32
    %14 = vector.broadcast %c1_i32 : i32 to vector<8x1xi32>
    %15 = arith.subi %13, %14 : vector<8x1xi32>
    %cst_14 = arith.constant 0.000000e+00 : f32
    %16 = vector.broadcast %cst_14 : f32 to vector<8x32xf32>
    %cst_15 = arith.constant 0.000000e+00 : f32
    %17 = vector.broadcast %cst_15 : f32 to vector<8x32xf32>
    %cst_16 = arith.constant 0.000000e+00 : f32
    %18 = vector.broadcast %cst_16 : f32 to vector<8x32xf32>
    %19 = vector.extract_strided_slice %7 {offsets = [0, 0, 0], sizes = [1, 8, 32], strides = [1, 1, 1]} : vector<8x8x32xf32> to vector<1x8x32xf32>
    %20 = vector.shape_cast %19 : vector<1x8x32xf32> to vector<8x32xf32>
    %cst_17 = arith.constant dense<0.000000e+00> : vector<8x32xf32>
    %21 = tpu.matmul %16, %8, %cst_17 {dimension_numbers = #tpu.dot_dimension_numbers<[1], [0], [0], [1], [0, 0, 1, 1], [], []>} : vector<8x32xf32>, vector<32x32xf32>, vector<8x32xf32> -> vector<8x32xf32>
    %22 = arith.addf %20, %21 : vector<8x32xf32>
    %23 = math.tanh %22 : vector<8x32xf32>
    %24 = tpu.concatenate %23, %17 in 1 : vector<8x32xf32>, vector<8x32xf32> -> vector<8x64xf32>
    %cst_18 = arith.constant dense<0.000000e+00> : vector<8x32xf32>
    %25 = tpu.matmul %24, %9, %cst_18 {dimension_numbers = #tpu.dot_dimension_numbers<[1], [0], [0], [1], [0, 0, 1, 1], [], []>} : vector<8x64xf32>, vector<64x32xf32>, vector<8x32xf32> -> vector<8x32xf32>
    %26 = arith.addf %25, %12 : vector<8x32xf32>
    %27 = math.tanh %26 : vector<8x32xf32>
    %c0_i32 = arith.constant 0 : i32
    %28 = vector.broadcast %c0_i32 : i32 to vector<8x1xi32>
    %29 = arith.cmpi eq, %15, %28 : vector<8x1xi32>
    %30 = vector.shape_cast %29 : vector<8x1xi1> to vector<8x1xi1>
    %31 = vector.broadcast %30 : vector<8x1xi1> to vector<8x32xi1>
    %32 = arith.select %31, %27, %18 : vector<8x32xi1>, vector<8x32xf32>
    %33 = vector.extract_strided_slice %7 {offsets = [1, 0, 0], sizes = [1, 8, 32], strides = [1, 1, 1]} : vector<8x8x32xf32> to vector<1x8x32xf32>
    %34 = vector.shape_cast %33 : vector<1x8x32xf32> to vector<8x32xf32>
    %cst_19 = arith.constant dense<0.000000e+00> : vector<8x32xf32>
    %35 = tpu.matmul %23, %8, %cst_19 {dimension_numbers = #tpu.dot_dimension_numbers<[1], [0], [0], [1], [0, 0, 1, 1], [], []>} : vector<8x32xf32>, vector<32x32xf32>, vector<8x32xf32> -> vector<8x32xf32>
    %36 = arith.addf %34, %35 : vector<8x32xf32>
    %37 = math.tanh %36 : vector<8x32xf32>
    %38 = tpu.concatenate %37, %27 in 1 : vector<8x32xf32>, vector<8x32xf32> -> vector<8x64xf32>
    %cst_20 = arith.constant dense<0.000000e+00> : vector<8x32xf32>
    %39 = tpu.matmul %38, %9, %cst_20 {dimension_numbers = #tpu.dot_dimension_numbers<[1], [0], [0], [1], [0, 0, 1, 1], [], []>} : vector<8x64xf32>, vector<64x32xf32>, vector<8x32xf32> -> vector<8x32xf32>
    %40 = arith.addf %39, %12 : vector<8x32xf32>
    %41 = math.tanh %40 : vector<8x32xf32>
    %c1_i32_21 = arith.constant 1 : i32
    %42 = vector.broadcast %c1_i32_21 : i32 to vector<8x1xi32>
    %43 = arith.cmpi eq, %15, %42 : vector<8x1xi32>
    %44 = vector.shape_cast %43 : vector<8x1xi1> to vector<8x1xi1>
    %45 = vector.broadcast %44 : vector<8x1xi1> to vector<8x32xi1>
    %46 = arith.select %45, %41, %32 : vector<8x32xi1>, vector<8x32xf32>
    %47 = vector.extract_strided_slice %7 {offsets = [2, 0, 0], sizes = [1, 8, 32], strides = [1, 1, 1]} : vector<8x8x32xf32> to vector<1x8x32xf32>
    %48 = vector.shape_cast %47 : vector<1x8x32xf32> to vector<8x32xf32>
    %cst_22 = arith.constant dense<0.000000e+00> : vector<8x32xf32>
    %49 = tpu.matmul %37, %8, %cst_22 {dimension_numbers = #tpu.dot_dimension_numbers<[1], [0], [0], [1], [0, 0, 1, 1], [], []>} : vector<8x32xf32>, vector<32x32xf32>, vector<8x32xf32> -> vector<8x32xf32>
    %50 = arith.addf %48, %49 : vector<8x32xf32>
    %51 = math.tanh %50 : vector<8x32xf32>
    %52 = tpu.concatenate %51, %41 in 1 : vector<8x32xf32>, vector<8x32xf32> -> vector<8x64xf32>
    %cst_23 = arith.constant dense<0.000000e+00> : vector<8x32xf32>
    %53 = tpu.matmul %52, %9, %cst_23 {dimension_numbers = #tpu.dot_dimension_numbers<[1], [0], [0], [1], [0, 0, 1, 1], [], []>} : vector<8x64xf32>, vector<64x32xf32>, vector<8x32xf32> -> vector<8x32xf32>
    %54 = arith.addf %53, %12 : vector<8x32xf32>
    %55 = math.tanh %54 : vector<8x32xf32>
    %c2_i32 = arith.constant 2 : i32
    %56 = vector.broadcast %c2_i32 : i32 to vector<8x1xi32>
    %57 = arith.cmpi eq, %15, %56 : vector<8x1xi32>
    %58 = vector.shape_cast %57 : vector<8x1xi1> to vector<8x1xi1>
    %59 = vector.broadcast %58 : vector<8x1xi1> to vector<8x32xi1>
    %60 = arith.select %59, %55, %46 : vector<8x32xi1>, vector<8x32xf32>
    %61 = vector.extract_strided_slice %7 {offsets = [3, 0, 0], sizes = [1, 8, 32], strides = [1, 1, 1]} : vector<8x8x32xf32> to vector<1x8x32xf32>
    %62 = vector.shape_cast %61 : vector<1x8x32xf32> to vector<8x32xf32>
    %cst_24 = arith.constant dense<0.000000e+00> : vector<8x32xf32>
    %63 = tpu.matmul %51, %8, %cst_24 {dimension_numbers = #tpu.dot_dimension_numbers<[1], [0], [0], [1], [0, 0, 1, 1], [], []>} : vector<8x32xf32>, vector<32x32xf32>, vector<8x32xf32> -> vector<8x32xf32>
    %64 = arith.addf %62, %63 : vector<8x32xf32>
    %65 = math.tanh %64 : vector<8x32xf32>
    %66 = tpu.concatenate %65, %55 in 1 : vector<8x32xf32>, vector<8x32xf32> -> vector<8x64xf32>
    %cst_25 = arith.constant dense<0.000000e+00> : vector<8x32xf32>
    %67 = tpu.matmul %66, %9, %cst_25 {dimension_numbers = #tpu.dot_dimension_numbers<[1], [0], [0], [1], [0, 0, 1, 1], [], []>} : vector<8x64xf32>, vector<64x32xf32>, vector<8x32xf32> -> vector<8x32xf32>
    %68 = arith.addf %67, %12 : vector<8x32xf32>
    %69 = math.tanh %68 : vector<8x32xf32>
    %c3_i32 = arith.constant 3 : i32
    %70 = vector.broadcast %c3_i32 : i32 to vector<8x1xi32>
    %71 = arith.cmpi eq, %15, %70 : vector<8x1xi32>
    %72 = vector.shape_cast %71 : vector<8x1xi1> to vector<8x1xi1>
    %73 = vector.broadcast %72 : vector<8x1xi1> to vector<8x32xi1>
    %74 = arith.select %73, %69, %60 : vector<8x32xi1>, vector<8x32xf32>
    %75 = vector.extract_strided_slice %7 {offsets = [4, 0, 0], sizes = [1, 8, 32], strides = [1, 1, 1]} : vector<8x8x32xf32> to vector<1x8x32xf32>
    %76 = vector.shape_cast %75 : vector<1x8x32xf32> to vector<8x32xf32>
    %cst_26 = arith.constant dense<0.000000e+00> : vector<8x32xf32>
    %77 = tpu.matmul %65, %8, %cst_26 {dimension_numbers = #tpu.dot_dimension_numbers<[1], [0], [0], [1], [0, 0, 1, 1], [], []>} : vector<8x32xf32>, vector<32x32xf32>, vector<8x32xf32> -> vector<8x32xf32>
    %78 = arith.addf %76, %77 : vector<8x32xf32>
    %79 = math.tanh %78 : vector<8x32xf32>
    %80 = tpu.concatenate %79, %69 in 1 : vector<8x32xf32>, vector<8x32xf32> -> vector<8x64xf32>
    %cst_27 = arith.constant dense<0.000000e+00> : vector<8x32xf32>
    %81 = tpu.matmul %80, %9, %cst_27 {dimension_numbers = #tpu.dot_dimension_numbers<[1], [0], [0], [1], [0, 0, 1, 1], [], []>} : vector<8x64xf32>, vector<64x32xf32>, vector<8x32xf32> -> vector<8x32xf32>
    %82 = arith.addf %81, %12 : vector<8x32xf32>
    %83 = math.tanh %82 : vector<8x32xf32>
    %c4_i32 = arith.constant 4 : i32
    %84 = vector.broadcast %c4_i32 : i32 to vector<8x1xi32>
    %85 = arith.cmpi eq, %15, %84 : vector<8x1xi32>
    %86 = vector.shape_cast %85 : vector<8x1xi1> to vector<8x1xi1>
    %87 = vector.broadcast %86 : vector<8x1xi1> to vector<8x32xi1>
    %88 = arith.select %87, %83, %74 : vector<8x32xi1>, vector<8x32xf32>
    %89 = vector.extract_strided_slice %7 {offsets = [5, 0, 0], sizes = [1, 8, 32], strides = [1, 1, 1]} : vector<8x8x32xf32> to vector<1x8x32xf32>
    %90 = vector.shape_cast %89 : vector<1x8x32xf32> to vector<8x32xf32>
    %cst_28 = arith.constant dense<0.000000e+00> : vector<8x32xf32>
    %91 = tpu.matmul %79, %8, %cst_28 {dimension_numbers = #tpu.dot_dimension_numbers<[1], [0], [0], [1], [0, 0, 1, 1], [], []>} : vector<8x32xf32>, vector<32x32xf32>, vector<8x32xf32> -> vector<8x32xf32>
    %92 = arith.addf %90, %91 : vector<8x32xf32>
    %93 = math.tanh %92 : vector<8x32xf32>
    %94 = tpu.concatenate %93, %83 in 1 : vector<8x32xf32>, vector<8x32xf32> -> vector<8x64xf32>
    %cst_29 = arith.constant dense<0.000000e+00> : vector<8x32xf32>
    %95 = tpu.matmul %94, %9, %cst_29 {dimension_numbers = #tpu.dot_dimension_numbers<[1], [0], [0], [1], [0, 0, 1, 1], [], []>} : vector<8x64xf32>, vector<64x32xf32>, vector<8x32xf32> -> vector<8x32xf32>
    %96 = arith.addf %95, %12 : vector<8x32xf32>
    %97 = math.tanh %96 : vector<8x32xf32>
    %c5_i32 = arith.constant 5 : i32
    %98 = vector.broadcast %c5_i32 : i32 to vector<8x1xi32>
    %99 = arith.cmpi eq, %15, %98 : vector<8x1xi32>
    %100 = vector.shape_cast %99 : vector<8x1xi1> to vector<8x1xi1>
    %101 = vector.broadcast %100 : vector<8x1xi1> to vector<8x32xi1>
    %102 = arith.select %101, %97, %88 : vector<8x32xi1>, vector<8x32xf32>
    %103 = vector.extract_strided_slice %7 {offsets = [6, 0, 0], sizes = [1, 8, 32], strides = [1, 1, 1]} : vector<8x8x32xf32> to vector<1x8x32xf32>
    %104 = vector.shape_cast %103 : vector<1x8x32xf32> to vector<8x32xf32>
    %cst_30 = arith.constant dense<0.000000e+00> : vector<8x32xf32>
    %105 = tpu.matmul %93, %8, %cst_30 {dimension_numbers = #tpu.dot_dimension_numbers<[1], [0], [0], [1], [0, 0, 1, 1], [], []>} : vector<8x32xf32>, vector<32x32xf32>, vector<8x32xf32> -> vector<8x32xf32>
    %106 = arith.addf %104, %105 : vector<8x32xf32>
    %107 = math.tanh %106 : vector<8x32xf32>
    %108 = tpu.concatenate %107, %97 in 1 : vector<8x32xf32>, vector<8x32xf32> -> vector<8x64xf32>
    %cst_31 = arith.constant dense<0.000000e+00> : vector<8x32xf32>
    %109 = tpu.matmul %108, %9, %cst_31 {dimension_numbers = #tpu.dot_dimension_numbers<[1], [0], [0], [1], [0, 0, 1, 1], [], []>} : vector<8x64xf32>, vector<64x32xf32>, vector<8x32xf32> -> vector<8x32xf32>
    %110 = arith.addf %109, %12 : vector<8x32xf32>
    %111 = math.tanh %110 : vector<8x32xf32>
    %c6_i32 = arith.constant 6 : i32
    %112 = vector.broadcast %c6_i32 : i32 to vector<8x1xi32>
    %113 = arith.cmpi eq, %15, %112 : vector<8x1xi32>
    %114 = vector.shape_cast %113 : vector<8x1xi1> to vector<8x1xi1>
    %115 = vector.broadcast %114 : vector<8x1xi1> to vector<8x32xi1>
    %116 = arith.select %115, %111, %102 : vector<8x32xi1>, vector<8x32xf32>
    %117 = vector.extract_strided_slice %7 {offsets = [7, 0, 0], sizes = [1, 8, 32], strides = [1, 1, 1]} : vector<8x8x32xf32> to vector<1x8x32xf32>
    %118 = vector.shape_cast %117 : vector<1x8x32xf32> to vector<8x32xf32>
    %cst_32 = arith.constant dense<0.000000e+00> : vector<8x32xf32>
    %119 = tpu.matmul %107, %8, %cst_32 {dimension_numbers = #tpu.dot_dimension_numbers<[1], [0], [0], [1], [0, 0, 1, 1], [], []>} : vector<8x32xf32>, vector<32x32xf32>, vector<8x32xf32> -> vector<8x32xf32>
    %120 = arith.addf %118, %119 : vector<8x32xf32>
    %121 = math.tanh %120 : vector<8x32xf32>
    %122 = tpu.concatenate %121, %111 in 1 : vector<8x32xf32>, vector<8x32xf32> -> vector<8x64xf32>
    %cst_33 = arith.constant dense<0.000000e+00> : vector<8x32xf32>
    %123 = tpu.matmul %122, %9, %cst_33 {dimension_numbers = #tpu.dot_dimension_numbers<[1], [0], [0], [1], [0, 0, 1, 1], [], []>} : vector<8x64xf32>, vector<64x32xf32>, vector<8x32xf32> -> vector<8x32xf32>
    %124 = arith.addf %123, %12 : vector<8x32xf32>
    %125 = math.tanh %124 : vector<8x32xf32>
    %c7_i32 = arith.constant 7 : i32
    %126 = vector.broadcast %c7_i32 : i32 to vector<8x1xi32>
    %127 = arith.cmpi eq, %15, %126 : vector<8x1xi32>
    %128 = vector.shape_cast %127 : vector<8x1xi1> to vector<8x1xi1>
    %129 = vector.broadcast %128 : vector<8x1xi1> to vector<8x32xi1>
    %130 = arith.select %129, %125, %116 : vector<8x32xi1>, vector<8x32xf32>
    %c0_34 = arith.constant 0 : index
    %c0_35 = arith.constant 0 : index
    %131 = vector.load %arg7[%c0_34, %c0_35] : memref<32x32xf32, #tpu.memory_space<vmem>>, vector<32x32xf32>
    %cst_36 = arith.constant dense<0.000000e+00> : vector<8x32xf32>
    %132 = tpu.matmul %130, %131, %cst_36 {dimension_numbers = #tpu.dot_dimension_numbers<[1], [0], [0], [1], [0, 0, 1, 1], [], []>} : vector<8x32xf32>, vector<32x32xf32>, vector<8x32xf32> -> vector<8x32xf32>
    %c0_37 = arith.constant 0 : index
    %c0_38 = arith.constant 0 : index
    %133 = vector.load %arg8[%c0_37, %c0_38] : memref<1x32xf32, #tpu.memory_space<vmem>>, vector<1x32xf32>
    %134 = vector.broadcast %133 : vector<1x32xf32> to vector<8x32xf32>
    %135 = arith.addf %132, %134 : vector<8x32xf32>
    %cst_39 = arith.constant 0.000000e+00 : f32
    %136 = vector.broadcast %cst_39 : f32 to vector<8x32xf32>
    %137 = arith.maximumf %135, %136 : vector<8x32xf32>
    %c0_40 = arith.constant 0 : index
    %c0_41 = arith.constant 0 : index
    %138 = vector.load %arg9[%c0_40, %c0_41] : memref<32x128xf32, #tpu.memory_space<vmem>>, vector<32x128xf32>
    %cst_42 = arith.constant dense<0.000000e+00> : vector<8x128xf32>
    %139 = tpu.matmul %137, %138, %cst_42 {dimension_numbers = #tpu.dot_dimension_numbers<[1], [0], [0], [1], [0, 0, 1, 1], [], []>} : vector<8x32xf32>, vector<32x128xf32>, vector<8x128xf32> -> vector<8x128xf32>
    %c0_43 = arith.constant 0 : index
    %c0_44 = arith.constant 0 : index
    %140 = vector.load %arg10[%c0_43, %c0_44] : memref<1x128xf32, #tpu.memory_space<vmem>>, vector<1x128xf32>
    %141 = vector.broadcast %140 : vector<1x128xf32> to vector<8x128xf32>
    %142 = arith.addf %139, %141 : vector<8x128xf32>
    %c0_45 = arith.constant 0 : index
    %c0_46 = arith.constant 0 : index
    %143 = vector.load %arg11[%c0_45, %c0_46] : memref<8x128xf32, #tpu.memory_space<vmem>>, vector<8x128xf32>
    tpu.vector_store %arg11[%c0_45, %c0_46], %142 {strides = array<i32>} : memref<8x128xf32, #tpu.memory_space<vmem>>, vector<8x128xf32>,
    return
  }
}

</mosaic_0001>

<bundles_post_ra>
// kernel: tpu_custom_call.1
= control target key start
LH: loop header
LB: loop body
LE: loop exit
PB: predicated region body
PF: predicated region fallthrough
CT: control target
= control target key end

     0   :  { %16 = vsyncpa [#allocation3], 0  ;;  %s2872_s0 = inlined_call_operand.vmem [shape: f32[8,8,32], index: 0, kind: input, shape index: {}]   ;;  %s2873_s1 = inlined_call_operand.vmem [shape: s32[8,1], index: 1, kind: input, shape index: {}]   ;;  %s2874_s2 = inlined_call_operand.vmem [shape: f32[32,32], index: 2, kind: input, shape index: {}]   ;;  %s2875_s3 = inlined_call_operand.hbm [shape: f32[32,32], index: 3, kind: input, shape index: {}]   ;;  %s2876_s4 = inlined_call_operand.vmem [shape: f32[1,32], index: 4, kind: input, shape index: {}]   ;;  %s2877_s5 = inlined_call_operand.vmem [shape: f32[64,32], index: 5, kind: input, shape index: {}]   ;;  %s2878_s6 = inlined_call_operand.vmem [shape: f32[1,32], index: 6, kind: input, shape index: {}]   ;;  %s2879_s7 = inlined_call_operand.vmem [shape: f32[32,32], index: 7, kind: input, shape index: {}]   ;;  %s2880_s8 = inlined_call_operand.vmem [shape: f32[1,32], index: 8, kind: input, shape index: {}]   ;;  %s2881_s9 = inlined_call_operand.hbm [shape: f32[32,128], index: 9, kind: input, shape index: {}]   ;;  %s2882_s10 = inlined_call_operand.vmem [shape: f32[1,128], index: 10, kind: input, shape index: {}]   ;;  %s2883_s11 = inlined_call_operand.hbm [shape: f32[8,128], index: 11, kind: output, shape index: {}]  }
   0x1   :  { %17 = vsyncpa [#allocation6], 0 }
   0x2   :  { %18 = vsyncpa [#allocation4], 0  ;;  %s2434_s17 = smov [#allocation2]   ;;  %s2362_s21 = scalar_lea.hbm %s2875_s3, 512 }
   0x3   :  { %s30_s18 = sshll.u32 %s2434_s17, 4  ;;  %p2363_p0 = scmp.ne.s32.totalorder %s2875_s3, %s2362_s21  ;;  %s31_s18 = int_to_ptr.vmem [resolvable:$true] %s30_s18 }
   0x4   :  { %p2366_p1 = scmp.lt.u32.totalorder %s2362_s21, %s2875_s3 }
   0x6   :  { %p2368_p2 = pnand %p2366_p1, %p2363_p0 }
   0x8   :  { %2371 = shalt.err (!%p2368_p2)
}
   0x9   :  { %s2372_s26 = scalar_lea.vmem %s31_s18, 512  ;;  %p2377_p4 = scmp.lt.s32.totalorder %s31_s18, %s31_s18 }
   0xa   :  { %p2373_p3 = scmp.ne.s32.totalorder %s31_s18, %s2372_s26  ;;  %p2378_p5 = scmp.lt.s32.totalorder %s2372_s26, %s2372_s26 }
   0xc   :  { %p2379_p6 = por %p2378_p5, %p2377_p4 }
   0xe   :  { %p2380_p7 = pnand %p2379_p6, %p2373_p3 }
  0x10   :  { %2383 = shalt.err (!%p2380_p7)
}
  0x11   :  { %s2435_s27 = smov 128   ;;  %s2436_s28 = smov 8  }
  0x12   :  { %36 = dma.hbm_to_vmem [thread:$0]  %s2875_s3, 512, %s31_s18, [#allocation3], %s2435_s27, %s2435_s27, %s2436_s28  }
  0x13   :  { %s2437_s12 = smov [#allocation5]   ;;  %s2384_s16 = scalar_lea.hbm %s2881_s9, 512 }
  0x14   :  { %s52_s13 = sshll.u32 %s2437_s12, 4  ;;  %p2385_p8 = scmp.ne.s32.totalorder %s2881_s9, %s2384_s16  ;;  %s53_s13 = int_to_ptr.vmem [resolvable:$true] %s52_s13 }
  0x15   :  { %p2388_p9 = scmp.lt.u32.totalorder %s2384_s16, %s2881_s9 }
  0x17   :  { %p2390_p10 = pnand %p2388_p9, %p2385_p8 }
  0x19   :  { %2393 = shalt.err (!%p2390_p10)
}
  0x1a   :  { %s2394_s22 = scalar_lea.vmem %s53_s13, 512  ;;  %p2399_p12 = scmp.lt.s32.totalorder %s53_s13, %s53_s13 }
  0x1b   :  { %p2395_p11 = scmp.ne.s32.totalorder %s53_s13, %s2394_s22  ;;  %p2400_p13 = scmp.lt.s32.totalorder %s2394_s22, %s2394_s22 }
  0x1d   :  { %p2401_p0 = por %p2400_p13, %p2399_p12 }
  0x1f   :  { %p2402_p1 = pnand %p2401_p0, %p2395_p11 }
  0x21   :  { %2405 = shalt.err (!%p2402_p1)
}
  0x22   :  { %58 = dma.hbm_to_vmem [thread:$0]  %s2881_s9, 512, %s53_s13, [#allocation6], %s2435_s27, %s2435_s27, %s2436_s28  }
  0x23   :  { %2428 = dma.done.wait [#allocation3], 512  }
  0x24   :  { %2429 = vsyncadd [#allocation3], 4294966784 }
  0x25   :  { %2430 = dma.done.wait [#allocation6], 512  }
  0x26   :  { %2431 = vsyncadd [#allocation6], 4294966784  ;;  %v2438_v0 = vmov 0.0|0.0   ;;  %vm2439_vm0 = vmmov 0   ;;  %v2440_v1 = vmov 0.0   ;;  %v75_v2 = vld [vmem:[%s2874_s2] sm:$0xff] }
  0x27   :  { %2162 = vmatprep.subr.bf16.mxu1 %v2438_v0  ;;  %1900 = vmatprep.mubr.msk.f32.mxu1 %vm2439_vm0, %v2440_v1  ;;  %v76_v3 = vld [vmem:[%s2874_s2 + $0x8] sm:$0xff]  ;;  %v216_v4 = vld [vmem:[#allocation2] sm:$0xff]  ;;  %vm86_vm1 = vcmask 261120   ;;  %v77_v7 = vld [vmem:[%s2874_s2 + $0x10] sm:$0xff]  ;;  %vm313_vm2 = vcmask 523264   ;;  %s2441_s22 = smov 32  }
  0x28   :  { %v2154_v5 = vpack.c.bf16 %v76_v3, %v75_v2  ;;  %v217_v6 = vld [vmem:[#allocation2 + $0x8] sm:$0xff]  ;;  %v78_v8 = vld [vmem:[%s2874_s2 + $0x18] sm:$0xff]  ;;  %v67_v11 = vld [vmem:[%s2872_s0] sm:$0xff]  ;;  %s2443_s12 = smov [#allocation7]  }
  0x29   :  { %v2543_v9 = vpack.c.bf16 %v217_v6, %v216_v4  ;;  %v2158_v10 = vpack.c.bf16 %v78_v8, %v77_v7  ;;  %v218_v12 = vld [vmem:[#allocation2 + $0x10] sm:$0xff]  ;;  %v219_v13 = vld [vmem:[#allocation2 + $0x18] sm:$0xff]  ;;  %1880 = vmatprep.mubr.msk.f32.mxu0 %vm86_vm1, %v67_v11  ;;  %v68_v15 = vld [vmem:[%s2872_s0 + $0x8] sm:$0xff]  ;;  %s1698_s2 = sshll.u32 %s2443_s12, 4  ;;  %s1699_s2 = int_to_ptr.vmem [resolvable:$true] %s1698_s2 }
  0x2a   :  { %2155 = vmatprep.subr.bf16.mxu0 %v2154_v5  ;;  %v2550_v14 = vpack.c.bf16 %v219_v13, %v218_v12  ;;  %v220_v16 = vld [vmem:[%s2877_s5] sm:$0xff]  ;;  %v221_v17 = vld [vmem:[%s2877_s5 + $0x8] sm:$0xff]  ;;  %v69_v19 = vld [vmem:[%s2872_s0 + $0x10] sm:$0xff]  ;;  %s2406_s13 = scalar_lea.vmem %s1699_s2, 128  ;;  %p2411_p3 = scmp.lt.s32.totalorder %s1699_s2, %s1699_s2 }
  0x2b   :  { %2157 = vmatpush3.bf16.msra.mxu0 %v2154_v5  ;;  %2164 = vmatpush3.bf16.msra.mxu1 %v2543_v9  ;;  %v2573_v18 = vpack.c.bf16 %v221_v17, %v220_v16  ;;  %v70_v20 = vld [vmem:[%s2872_s0 + $0x18] sm:$0xff]  ;;  %v222_v21 = vld [vmem:[%s2877_s5 + $0x10] sm:$0xff]  ;;  %v71_v24 = vld [vmem:[%s2872_s0 + $0x20] sm:$0xff]  ;;  %p2407_p2 = scmp.ne.s32.totalorder %s1699_s2, %s2406_s13  ;;  %p2412_p4 = scmp.lt.s32.totalorder %s2406_s13, %s2406_s13 }
  0x2c   :  { %2159 = vmatprep.subr.bf16.mxu0 %v2158_v10  ;;  %2165 = vmatprep.subr.bf16.mxu1 %v2438_v0  ;;  %v223_v22 = vld [vmem:[%s2877_s5 + $0x18] sm:$0xff]  ;;  %v72_v25 = vld [vmem:[%s2872_s0 + $0x28] sm:$0xff]  ;;  %v224_v26 = vld [vmem:[%s2877_s5 + $0x20] sm:$0xff] }
  0x2d   :  { %v2591_v23 = vpack.c.bf16 %v223_v22, %v222_v21  ;;  %v225_v27 = vld [vmem:[%s2877_s5 + $0x28] sm:$0xff]  ;;  %v73_v28 = vld [vmem:[%s2872_s0 + $0x30] sm:$0xff]  ;;  %v227_v31 = vld [vmem:[%s2877_s5 + $0x38] sm:$0xff]  ;;  %p2413_p5 = por %p2412_p4, %p2411_p3 }
  0x2e   :  { %v2611_v29 = vpack.c.bf16 %v225_v27, %v224_v26  ;;  %v226_v30 = vld [vmem:[%s2877_s5 + $0x30] sm:$0xff]  ;;  %v74_v32 = vld [vmem:[%s2872_s0 + $0x38] sm:$0xff]  ;;  %v2636_v34 = vld [vmem:[%s2876_s4] ss:$0 sm:$0xff] }
  0x2f   :  { %2161 = vmatpush3.bf16.msra.mxu0 %v2158_v10  ;;  %2167 = vmatpush3.bf16.msra.mxu1 %v2550_v14  ;;  %v2625_v33 = vpack.c.bf16 %v227_v31, %v226_v30  ;;  %v2670_v50 = vld [vmem:[%s2878_s6] ss:$0 sm:$0xff]  ;;  %p2414_p6 = pnand %p2413_p5, %p2407_p2 }
  0x30   :  { %2168 = vmatprep.subr.bf16.mxu0 %v2438_v0  ;;  %2180 = vmatprep.subr.bf16.mxu1 %v2438_v0 }
  0x32   :  { %1881 = vmatmul.mubr.msk.f32.vlgmr.msra.gmra.mrb[0].mxu0 %vm86_vm1, %v68_v15  ;;  %1901 = vmatmul.mubr.f32.vlgmr.msra.gmra.mrb[0].mxu1 %v2440_v1 }
  0x33   :  { %2182 = vmatpush3.bf16.msra.mxu1 %v2543_v9  ;;  %1930 = vmatprep.mubr.msk.f32.mxu1 %vm2439_vm0, %v2440_v1 }
  0x34   :  { %2183 = vmatprep.subr.bf16.mxu1 %v2438_v0  ;;  %2170 = vmatpush3.bf16.msra.mxu0 %v2573_v18 }
  0x35   :  { %1883 = vmatprep.mubr.msk.f32.mxu0 %vm86_vm1, %v69_v19  ;;  %2171 = vmatprep.subr.bf16.mxu0 %v2438_v0 }
  0x36   :  { %1884 = vmatmul.mubr.msk.f32.gmra.mrb[2].mxu0 %vm86_vm1, %v70_v20 }
  0x37   :  { %2185 = vmatpush3.bf16.msra.mxu1 %v2550_v14  ;;  %1886 = vmatprep.mubr.msk.f32.mxu0 %vm86_vm1, %v71_v24 }
  0x38   :  { %2186 = vmatprep.subr.bf16.mxu1 %v2438_v0  ;;  %2173 = vmatpush3.bf16.msra.mxu0 %v2591_v23 }
  0x39   :  { %2174 = vmatprep.subr.bf16.mxu0 %v2438_v0 }
  0x3a   :  { %1887 = vmatmul.mubr.msk.f32.gmra.mrb[4].mxu0 %vm86_vm1, %v72_v25 }
  0x3b   :  { %1889 = vmatprep.mubr.msk.f32.mxu0 %vm86_vm1, %v73_v28 }
  0x3c   :  { %2176 = vmatpush3.bf16.msra.mxu0 %v2611_v29 }
  0x3d   :  { %2177 = vmatprep.subr.bf16.mxu0 %v2438_v0 }
  0x3e   :  { %1890 = vmatmul.mubr.msk.f32.gmra.mrb[6].mxu0 %vm86_vm1, %v74_v32 }
  0x3f   :  { %1919 = vmatprep.mubr.msk.f32.mxu0 %vm2439_vm0, %v2440_v1 }
  0x40   :  { %2179 = vmatpush3.bf16.msra.mxu0 %v2625_v33 }
  0x41   :  { %2198 = vmatprep.subr.bf16.mxu0 %v2438_v0 }
 0x105   :  { %v1882_v35 = vpop.f32.mrb[0].mxu0  ;;  %v306_v36 = vpop.f32.mrb[0].mxu1 }
 0x106   :  { %v177_v37 = vpop.f32.mrb[1].mxu0  ;;  %v1902_v38 = vpop.f32.mrb[1].mxu1  ;;  %v183_v49 = vadd.f32 %v1882_v35, %v2636_v34 }
 0x107   :  { %v178_v39 = vadd.f32 %v2636_v34, %v177_v37 }
 0x109   :  { %v310_v40 = vadd.f32 %v306_v36, %v178_v39  ;;  %v1885_v43 = vpop.f32.mrb[2].mxu0 }
 0x10a   :  { %v187_v44 = vpop.f32.mrb[3].mxu0  ;;  %v193_v8 = vadd.f32 %v1885_v43, %v2636_v34 }
 0x10b   :  { %2330 = vtanh.f32 %v310_v40  ;;  %v188_v61 = vadd.f32 %v2636_v34, %v187_v44 }
 0x10d   :  { %v2658_v45 = vpop.f32.mrb[4].mxu0 }
 0x10e   :  { %v2660_v46 = vpop.f32.mrb[5].mxu0  ;;  %v203_v36 = vadd.f32 %v2658_v45, %v2636_v34 }
 0x10f   :  { %v198_v21 = vadd.f32 %v2636_v34, %v2660_v46 }
 0x111   :  { %v2662_v47 = vpop.f32.mrb[6].mxu0 }
 0x112   :  { %v2664_v48 = vpop.f32.mrb[7].mxu0 }
 0x115   :  { %v2331_v41 = vpop.eup %2330 }
 0x116   :  { %1931 = vmatmul.mubr.msk.f32.vlgmr.msra.gmra.mrb[2].mxu1 %vm86_vm1, %v2331_v41  ;;  %v312_v42 = vsel %vm86_vm1, %v2331_v41, 0.0 }
 0x117   :  { %1920 = vmatmul.mubr.msk.f32.vlgmr.msra.gmra.mrb[8].mxu0 %vm313_vm2, %v312_v42  ;;  %2188 = vmatpush3.bf16.msra.mxu1 %v2573_v18 }
 0x118   :  { %2200 = vmatpush3.bf16.msra.mxu0 %v2543_v9  ;;  %1960 = vmatprep.mubr.msk.f32.mxu0 %vm2439_vm0, %v2440_v1 }
 0x119   :  { %2201 = vmatprep.subr.bf16.mxu0 %v2438_v0  ;;  %2189 = vmatprep.subr.bf16.mxu1 %v2438_v0 }
 0x11a   :  { %1949 = vmatprep.mubr.msk.f32.mxu1 %vm2439_vm0, %v2440_v1 }
 0x11b   :  { %2191 = vmatpush3.bf16.msra.mxu1 %v2591_v23 }
 0x11c   :  { %2203 = vmatpush3.bf16.msra.mxu0 %v2550_v14  ;;  %2192 = vmatprep.subr.bf16.mxu1 %v2438_v0 }
 0x11d   :  { %2204 = vmatprep.subr.bf16.mxu0 %v2438_v0 }
 0x11f   :  { %2194 = vmatpush3.bf16.msra.mxu1 %v2611_v29 }
 0x120   :  { %2195 = vmatprep.subr.bf16.mxu1 %v2438_v0 }
 0x123   :  { %2197 = vmatpush3.bf16.msra.mxu1 %v2625_v33 }
 0x124   :  { %2216 = vmatprep.subr.bf16.mxu1 %v2438_v0 }
 0x1e9   :  { %v464_v51 = vpop.f32.mrb[2].mxu1 }
 0x1ea   :  { %v468_v52 = vadd.f32 %v464_v51, %v183_v49  ;;  %v383_v53 = vpop.f32.mrb[8].mxu0  ;;  %v1932_v54 = vpop.f32.mrb[3].mxu1  ;;  %v208_v49 = vadd.f32 %v2636_v34, %v2664_v48 }
 0x1eb   :  { %v384_v55 = vadd.f32 %v2670_v50, %v383_v53  ;;  %v1921_v56 = vpop.f32.mrb[9].mxu0 }
 0x1ec   :  { %2332 = vtanh.f32 %v468_v52 }
 0x1ed   :  { %2334 = vtanh.f32 %v384_v55 }
 0x1f6   :  { %v2333_v57 = vpop.eup %2332 }
 0x1f7   :  { %v2673_v58 = vpop.eup %2334  ;;  %1961 = vmatmul.mubr.msk.f32.vlgmr.msra.gmra.mrb[10].mxu0 %vm86_vm1, %v2333_v57 }
 0x1f8   :  { %471 = vrot.lane.b32.xlu0 %v2673_v58, %s2441_s22  ;;  %2206 = vmatpush3.bf16.msra.mxu0 %v2573_v18 }
 0x1f9   :  { %2207 = vmatprep.subr.bf16.mxu0 %v2438_v0  ;;  %1979 = vmatprep.mubr.msk.f32.mxu0 %vm2439_vm0, %v2440_v1 }
 0x1fc   :  { %2209 = vmatpush3.bf16.msra.mxu0 %v2591_v23 }
 0x1fd   :  { %2210 = vmatprep.subr.bf16.mxu0 %v2438_v0 }
 0x200   :  { %2212 = vmatpush3.bf16.msra.mxu0 %v2611_v29 }
 0x201   :  { %2213 = vmatprep.subr.bf16.mxu0 %v2438_v0 }
 0x204   :  { %2215 = vmatpush3.bf16.msra.mxu0 %v2625_v33 }
 0x205   :  { %2234 = vmatprep.subr.bf16.mxu0 %v2438_v0 }
 0x26a   :  { %v472_v59 = vpop.permute.xlu0 %471 }
 0x26b   :  { %v474_v60 = vsel %vm86_vm1, %v2333_v57, %v472_v59  ;;  %v213_v59 = vadd.f32 %v2662_v47, %v2636_v34 }
 0x26c   :  { %1950 = vmatmul.mubr.msk.f32.vlgmr.msra.gmra.mrb[4].mxu1 %vm313_vm2, %v474_v60 }
 0x26d   :  { %2218 = vmatpush3.bf16.msra.mxu1 %v2543_v9  ;;  %1990 = vmatprep.mubr.msk.f32.mxu1 %vm2439_vm0, %v2440_v1 }
 0x26e   :  { %2219 = vmatprep.subr.bf16.mxu1 %v2438_v0 }
 0x271   :  { %2221 = vmatpush3.bf16.msra.mxu1 %v2550_v14 }
 0x272   :  { %2222 = vmatprep.subr.bf16.mxu1 %v2438_v0 }
 0x2ca   :  { %v625_v62 = vpop.f32.mrb[10].mxu0 }
 0x2cb   :  { %v629_v63 = vadd.f32 %v625_v62, %v188_v61  ;;  %v1962_v2 = vpop.f32.mrb[11].mxu0 }
 0x2cd   :  { %2336 = vtanh.f32 %v629_v63 }
 0x2d7   :  { %v2337_v3 = vpop.eup %2336 }
 0x2d8   :  { %1991 = vmatmul.mubr.msk.f32.vlgmr.msra.gmra.mrb[6].mxu1 %vm86_vm1, %v2337_v3 }
 0x2d9   :  { %2224 = vmatpush3.bf16.msra.mxu1 %v2573_v18  ;;  %2009 = vmatprep.mubr.msk.f32.mxu1 %vm2439_vm0, %v2440_v1 }
 0x2da   :  { %2225 = vmatprep.subr.bf16.mxu1 %v2438_v0 }
 0x2dd   :  { %2227 = vmatpush3.bf16.msra.mxu1 %v2591_v23 }
 0x2de   :  { %2228 = vmatprep.subr.bf16.mxu1 %v2438_v0 }
 0x2e1   :  { %2230 = vmatpush3.bf16.msra.mxu1 %v2611_v29 }
 0x2e2   :  { %2231 = vmatprep.subr.bf16.mxu1 %v2438_v0 }
 0x2e5   :  { %2233 = vmatpush3.bf16.msra.mxu1 %v2625_v33 }
 0x2e6   :  { %2252 = vmatprep.subr.bf16.mxu1 %v2438_v0 }
 0x33f   :  { %v544_v4 = vpop.f32.mrb[4].mxu1 }
 0x340   :  { %v545_v5 = vadd.f32 %v2670_v50, %v544_v4  ;;  %v1951_v6 = vpop.f32.mrb[5].mxu1 }
 0x342   :  { %2338 = vtanh.f32 %v545_v5 }
 0x34c   :  { %v2709_v7 = vpop.eup %2338 }
 0x34d   :  { %632 = vrot.lane.b32.xlu0 %v2709_v7, %s2441_s22 }
 0x3ab   :  { %v786_v10 = vpop.f32.mrb[6].mxu1 }
 0x3ac   :  { %v790_v11 = vadd.f32 %v786_v10, %v193_v8  ;;  %v1992_v12 = vpop.f32.mrb[7].mxu1 }
 0x3ae   :  { %2340 = vtanh.f32 %v790_v11 }
 0x3b8   :  { %v2341_v16 = vpop.eup %2340 }
 0x3bf   :  { %v633_v13 = vpop.permute.xlu0 %632 }
 0x3c0   :  { %v635_v15 = vsel %vm86_vm1, %v2337_v3, %v633_v13 }
 0x3c1   :  { %1980 = vmatmul.mubr.msk.f32.vlgmr.msra.gmra.mrb[12].mxu0 %vm313_vm2, %v635_v15 }
 0x3c2   :  { %2236 = vmatpush3.bf16.msra.mxu0 %v2543_v9  ;;  %2020 = vmatprep.mubr.msk.f32.mxu0 %vm2439_vm0, %v2440_v1 }
 0x3c3   :  { %2237 = vmatprep.subr.bf16.mxu0 %v2438_v0 }
 0x3c6   :  { %2239 = vmatpush3.bf16.msra.mxu0 %v2550_v14 }
 0x3c7   :  { %2240 = vmatprep.subr.bf16.mxu0 %v2438_v0 }
 0x3c9   :  { %2021 = vmatmul.mubr.msk.f32.vlgmr.msra.gmra.mrb[14].mxu0 %vm86_vm1, %v2341_v16 }
 0x3ca   :  { %2242 = vmatpush3.bf16.msra.mxu0 %v2573_v18  ;;  %2039 = vmatprep.mubr.msk.f32.mxu0 %vm2439_vm0, %v2440_v1 }
 0x3cb   :  { %2243 = vmatprep.subr.bf16.mxu0 %v2438_v0 }
 0x3ce   :  { %2245 = vmatpush3.bf16.msra.mxu0 %v2591_v23 }
 0x3cf   :  { %2246 = vmatprep.subr.bf16.mxu0 %v2438_v0 }
 0x3d2   :  { %2248 = vmatpush3.bf16.msra.mxu0 %v2611_v29 }
 0x3d3   :  { %2249 = vmatprep.subr.bf16.mxu0 %v2438_v0 }
 0x3d6   :  { %2251 = vmatpush3.bf16.msra.mxu0 %v2625_v33 }
 0x3d7   :  { %2270 = vmatprep.subr.bf16.mxu0 %v2438_v0 }
 0x494   :  { %v705_v17 = vpop.f32.mrb[12].mxu0 }
 0x495   :  { %v706_v19 = vadd.f32 %v2670_v50, %v705_v17  ;;  %v1981_v20 = vpop.f32.mrb[13].mxu0 }
 0x496   :  { %v1522_v20 = vld [vmem:[%s2879_s7] sm:$0xff] }
 0x497   :  { %2342 = vtanh.f32 %v706_v19 }
 0x49c   :  { %v947_v22 = vpop.f32.mrb[14].mxu0 }
 0x49d   :  { %v951_v24 = vadd.f32 %v947_v22, %v198_v21  ;;  %v2022_v25 = vpop.f32.mrb[15].mxu0  ;;  %v1523_v21 = vld [vmem:[%s2879_s7 + $0x8] sm:$0xff]  ;;  %v1524_v22 = vld [vmem:[%s2879_s7 + $0x10] sm:$0xff] }
 0x49e   :  { %v1525_v25 = vld [vmem:[%s2879_s7 + $0x18] sm:$0xff] }
 0x49f   :  { %2344 = vtanh.f32 %v951_v24  ;;  %v2307_v24 = vpack.c.bf16 %v1523_v21, %v1522_v20 }
 0x4a1   :  { %v2736_v26 = vpop.eup %2342 }
 0x4a2   :  { %793 = vrot.lane.b32.xlu1 %v2736_v26, %s2441_s22 }
 0x4a9   :  { %v2345_v30 = vpop.eup %2344 }
 0x514   :  { %v794_v27 = vpop.permute.xlu1 %793 }
 0x515   :  { %v796_v28 = vsel %vm86_vm1, %v2341_v16, %v794_v27  ;;  %v2310_v27 = vpack.c.bf16 %v1525_v25, %v1524_v22 }
 0x516   :  { %2010 = vmatmul.mubr.msk.f32.vlgmr.msra.gmra.mrb[8].mxu1 %vm313_vm2, %v796_v28 }
 0x517   :  { %2254 = vmatpush3.bf16.msra.mxu1 %v2543_v9  ;;  %2050 = vmatprep.mubr.msk.f32.mxu1 %vm2439_vm0, %v2440_v1 }
 0x518   :  { %2255 = vmatprep.subr.bf16.mxu1 %v2438_v0 }
 0x51b   :  { %2257 = vmatpush3.bf16.msra.mxu1 %v2550_v14 }
 0x51c   :  { %2258 = vmatprep.subr.bf16.mxu1 %v2438_v0 }
 0x51e   :  { %2051 = vmatmul.mubr.msk.f32.vlgmr.msra.gmra.mrb[10].mxu1 %vm86_vm1, %v2345_v30 }
 0x51f   :  { %2260 = vmatpush3.bf16.msra.mxu1 %v2573_v18  ;;  %2069 = vmatprep.mubr.msk.f32.mxu1 %vm2439_vm0, %v2440_v1 }
 0x520   :  { %2261 = vmatprep.subr.bf16.mxu1 %v2438_v0 }
 0x523   :  { %2263 = vmatpush3.bf16.msra.mxu1 %v2591_v23 }
 0x524   :  { %2264 = vmatprep.subr.bf16.mxu1 %v2438_v0 }
 0x527   :  { %2266 = vmatpush3.bf16.msra.mxu1 %v2611_v29 }
 0x528   :  { %2267 = vmatprep.subr.bf16.mxu1 %v2438_v0 }
 0x52b   :  { %2269 = vmatpush3.bf16.msra.mxu1 %v2625_v33 }
 0x52c   :  { %2288 = vmatprep.subr.bf16.mxu1 %v2438_v0 }
 0x5e9   :  { %v866_v31 = vpop.f32.mrb[8].mxu1 }
 0x5ea   :  { %v867_v32 = vadd.f32 %v2670_v50, %v866_v31  ;;  %v2011_v35 = vpop.f32.mrb[9].mxu1 }
 0x5ec   :  { %2346 = vtanh.f32 %v867_v32 }
 0x5f1   :  { %v1108_v37 = vpop.f32.mrb[10].mxu1 }
 0x5f2   :  { %v1112_v38 = vadd.f32 %v1108_v37, %v203_v36  ;;  %v2052_v39 = vpop.f32.mrb[11].mxu1 }
 0x5f4   :  { %2348 = vtanh.f32 %v1112_v38 }
 0x5f6   :  { %v2762_v40 = vpop.eup %2346 }
 0x5f7   :  { %954 = vrot.lane.b32.xlu1 %v2762_v40, %s2441_s22 }
 0x5fe   :  { %v2349_v43 = vpop.eup %2348 }
 0x669   :  { %v955_v41 = vpop.permute.xlu1 %954 }
 0x66a   :  { %v957_v42 = vsel %vm86_vm1, %v2345_v30, %v955_v41 }
 0x66b   :  { %2040 = vmatmul.mubr.msk.f32.vlgmr.msra.gmra.mrb[16].mxu0 %vm313_vm2, %v957_v42 }
 0x66c   :  { %2272 = vmatpush3.bf16.msra.mxu0 %v2543_v9  ;;  %2080 = vmatprep.mubr.msk.f32.mxu0 %vm2439_vm0, %v2440_v1 }
 0x66d   :  { %2273 = vmatprep.subr.bf16.mxu0 %v2438_v0 }
 0x670   :  { %2275 = vmatpush3.bf16.msra.mxu0 %v2550_v14 }
 0x671   :  { %2276 = vmatprep.subr.bf16.mxu0 %v2438_v0 }
 0x673   :  { %2081 = vmatmul.mubr.msk.f32.vlgmr.msra.gmra.mrb[18].mxu0 %vm86_vm1, %v2349_v43 }
 0x674   :  { %2278 = vmatpush3.bf16.msra.mxu0 %v2573_v18  ;;  %2099 = vmatprep.mubr.msk.f32.mxu0 %vm2439_vm0, %v2440_v1 }
 0x675   :  { %2279 = vmatprep.subr.bf16.mxu0 %v2438_v0 }
 0x678   :  { %2281 = vmatpush3.bf16.msra.mxu0 %v2591_v23 }
 0x679   :  { %2282 = vmatprep.subr.bf16.mxu0 %v2438_v0 }
 0x67c   :  { %2284 = vmatpush3.bf16.msra.mxu0 %v2611_v29 }
 0x67d   :  { %2285 = vmatprep.subr.bf16.mxu0 %v2438_v0 }
 0x680   :  { %2287 = vmatpush3.bf16.msra.mxu0 %v2625_v33 }
 0x681   :  { %2306 = vmatprep.subr.bf16.mxu0 %v2438_v0 }
 0x73e   :  { %v1027_v44 = vpop.f32.mrb[16].mxu0 }
 0x73f   :  { %v1028_v45 = vadd.f32 %v2670_v50, %v1027_v44  ;;  %v2041_v46 = vpop.f32.mrb[17].mxu0 }
 0x740   :  { %v1607_v46 = vld [vmem:[#allocation5] sm:$0xff] }
 0x741   :  { %2350 = vtanh.f32 %v1028_v45 }
 0x746   :  { %v1269_v51 = vpop.f32.mrb[18].mxu0 }
 0x747   :  { %v1273_v52 = vadd.f32 %v1269_v51, %v208_v49  ;;  %v2082_v53 = vpop.f32.mrb[19].mxu0 }
 0x749   :  { %2352 = vtanh.f32 %v1273_v52 }
 0x74b   :  { %v2788_v54 = vpop.eup %2350 }
 0x74c   :  { %1115 = vrot.lane.b32.xlu0 %v2788_v54, %s2441_s22 }
 0x753   :  { %v2353_v48 = vpop.eup %2352 }
 0x7be   :  { %v1116_v55 = vpop.permute.xlu0 %1115 }
 0x7bf   :  { %v1118_v56 = vsel %vm86_vm1, %v2349_v43, %v1116_v55 }
 0x7c0   :  { %2070 = vmatmul.mubr.msk.f32.vlgmr.msra.gmra.mrb[12].mxu1 %vm313_vm2, %v1118_v56  ;;  %v1734_v56 = vld [vmem:[%s2880_s8] ss:$0 sm:$0xff] }
 0x7c1   :  { %2290 = vmatpush3.bf16.msra.mxu1 %v2543_v9  ;;  %2110 = vmatprep.mubr.msk.f32.mxu1 %vm2439_vm0, %v2440_v1  ;;  %v2442_v9 = vmov 0  }
 0x7c2   :  { %2291 = vmatprep.subr.bf16.mxu1 %v2438_v0  ;;  %2328 = vset.pattern.permute.xlu1 %v2442_v9 }
 0x7c3   :  { %2329 = vset.pattern.permute.xlu0 %v2442_v9 }
 0x7c5   :  { %2293 = vmatpush3.bf16.msra.mxu1 %v2550_v14 }
 0x7c6   :  { %2294 = vmatprep.subr.bf16.mxu1 %v2438_v0 }
 0x7c8   :  { %2111 = vmatmul.mubr.msk.f32.vlgmr.msra.gmra.mrb[14].mxu1 %vm86_vm1, %v2353_v48 }
 0x7c9   :  { %2296 = vmatpush3.bf16.msra.mxu1 %v2573_v18  ;;  %2129 = vmatprep.mubr.msk.f32.mxu1 %vm2439_vm0, %v2440_v1 }
 0x7ca   :  { %2297 = vmatprep.subr.bf16.mxu1 %v2438_v0 }
 0x7cd   :  { %2299 = vmatpush3.bf16.msra.mxu1 %v2591_v23  ;;  %v235_v23 = vld [vmem:[%s2873_s1] sm:$0xff] }
 0x7ce   :  { %2300 = vmatprep.subr.bf16.mxu1 %v2438_v0  ;;  %v1718_v60 = vadd.s32 4294967295, %v235_v23 }
 0x7d0   :  { %vm388_vm3 = vcmp.eq.s32.totalorder %v1718_v60, 0  ;;  %vm710_vm4 = vcmp.eq.s32.totalorder %v1718_v60, 2  ;;  %vm871_vm5 = vcmp.eq.s32.totalorder %v1718_v60, 3  ;;  %vm1193_vm6 = vcmp.eq.s32.totalorder %v1718_v60, 5 }
 0x7d1   :  { %2302 = vmatpush3.bf16.msra.mxu1 %v2611_v29  ;;  %v389_v63 = vsel %vm388_vm3, 1, %v2442_v9  ;;  %v711_v34 = vsel %vm710_vm4, 1, %v2442_v9  ;;  %v872_v47 = vsel %vm871_vm5, 1, %v2442_v9  ;;  %v1194_v4 = vsel %vm1193_vm6, 1, %v2442_v9 }
 0x7d2   :  { %2303 = vmatprep.subr.bf16.mxu1 %v2438_v0  ;;  %vm549_vm7 = vcmp.eq.s32.totalorder %v1718_v60, 1  ;;  %vm1032_vm8 = vcmp.eq.s32.totalorder %v1718_v60, 4  ;;  %vm1354_vm9 = vcmp.eq.s32.totalorder %v1718_v60, 6  ;;  %vm1515_vm10 = vcmp.eq.s32.totalorder %v1718_v60, 7 }
 0x7d3   :  { %v550_v11 = vsel %vm549_vm7, 1, %v2442_v9  ;;  %v1033_v12 = vsel %vm1032_vm8, 1, %v2442_v9  ;;  %v1355_v13 = vsel %vm1354_vm9, 1, %v2442_v9  ;;  %v1516_v15 = vsel %vm1515_vm10, 1, %v2442_v9 }
 0x7d5   :  { %2305 = vmatpush3.bf16.msra.mxu1 %v2625_v33 }
 0x893   :  { %v1188_v14 = vpop.f32.mrb[12].mxu1 }
 0x894   :  { %v1189_v18 = vadd.f32 %v2670_v50, %v1188_v14  ;;  %v2071_v57 = vpop.f32.mrb[13].mxu1 }
 0x896   :  { %2354 = vtanh.f32 %v1189_v18 }
 0x89b   :  { %v1430_v29 = vpop.f32.mrb[14].mxu1 }
 0x89c   :  { %v1434_v61 = vadd.f32 %v1430_v29, %v213_v59  ;;  %v2112_v62 = vpop.f32.mrb[15].mxu1 }
 0x8a0   :  { %v2816_v33 = vpop.eup %2354 }
 0x8a1   :  { %1276 = vrot.lane.b32.xlu1 %v2816_v33, %s2441_s22 }
 0x8a5   :  { %391 = vperm.xlu1 %2328, %v389_v63  }
 0x8a9   :  { %713 = vperm.xlu1 %2328, %v711_v34  }
 0x8ad   :  { %874 = vperm.xlu1 %2328, %v872_v47  }
 0x8b1   :  { %1196 = vperm.xlu1 %2328, %v1194_v4  }
 0x8b5   :  { %1518 = vperm.xlu1 %2328, %v1516_v15  }
 0x913   :  { %v1277_v2 = vpop.permute.xlu1 %1276 }
 0x914   :  { %v1279_v3 = vsel %vm86_vm1, %v2353_v48, %v1277_v2 }
 0x915   :  { %2100 = vmatmul.mubr.msk.f32.vlgmr.msra.gmra.mrb[20].mxu0 %vm313_vm2, %v1279_v3 }
 0x916   :  { %2140 = vmatprep.mubr.msk.f32.mxu0 %vm2439_vm0, %v2440_v1  ;;  %2308 = vmatpush3.bf16.msra.mxu0 %v2307_v24 }
 0x917   :  { %2309 = vmatprep.subr.bf16.mxu0 %v2438_v0 }
 0x91a   :  { %2311 = vmatpush3.bf16.msra.mxu0 %v2310_v27 }
 0x91b   :  { %2312 = vmatprep.subr.bf16.mxu0 %v2438_v0 }
 0x924   :  { %v392_v28 = vpop.permute.xlu1 %391 }
 0x925   :  { %vm393_vm11 = vcmp.eq.s32.totalorder %v392_v28, 1 }
 0x926   :  { %v394_v32 = vsel %vm393_vm11, %v2673_v58, 0.0 }
 0x928   :  { %v714_v30 = vpop.permute.xlu1 %713 }
 0x929   :  { %vm715_vm13 = vcmp.eq.s32.totalorder %v714_v30, 1 }
 0x92c   :  { %v875_v36 = vpop.permute.xlu1 %874 }
 0x92d   :  { %vm876_vm14 = vcmp.eq.s32.totalorder %v875_v36, 1 }
 0x930   :  { %v1197_v44 = vpop.permute.xlu1 %1196 }
 0x934   :  { %v1519_v49 = vpop.permute.xlu1 %1518 }
 0x935   :  { %vm1520_vm4 = vcmp.eq.s32.totalorder %v1519_v49, 1 }
 0x9e8   :  { %v1349_v5 = vpop.f32.mrb[20].mxu0 }
 0x9e9   :  { %v1350_v6 = vadd.f32 %v2670_v50, %v1349_v5  ;;  %v2101_v8 = vpop.f32.mrb[21].mxu0 }
 0x9eb   :  { %2356 = vtanh.f32 %v1350_v6 }
 0x9ec   :  { %2358 = vtanh.f32 %v1434_v61 }
 0x9f5   :  { %v2357_v10 = vpop.eup %2356 }
 0x9f6   :  { %1437 = vrot.lane.b32.xlu0 %v2357_v10, %s2441_s22  ;;  %v2359_v16 = vpop.eup %2358 }
 0x9fa   :  { %552 = vperm.xlu0 %2329, %v550_v11  }
 0x9fe   :  { %1035 = vperm.xlu0 %2329, %v1033_v12  }
 0xa02   :  { %1357 = vperm.xlu0 %2329, %v1355_v13  }
 0xa68   :  { %v1438_v17 = vpop.permute.xlu0 %1437 }
 0xa69   :  { %v1440_v19 = vsel %vm86_vm1, %v2359_v16, %v1438_v17 }
 0xa6a   :  { %2130 = vmatmul.mubr.msk.f32.vlgmr.msra.gmra.mrb[16].mxu1 %vm313_vm2, %v1440_v19  ;;  %vm1198_vm2 = vcmp.eq.s32.totalorder %v1197_v44, 1 }
 0xa79   :  { %v553_v31 = vpop.permute.xlu0 %552 }
 0xa7a   :  { %vm554_vm12 = vcmp.eq.s32.totalorder %v553_v31, 1 }
 0xa7b   :  { %v555_v35 = vsel %vm554_vm12, %v2709_v7, %v394_v32  ;;  %v1608_v7 = vld [vmem:[#allocation5 + $0x8] sm:$0xff] }
 0xa7c   :  { %v716_v42 = vsel %vm715_vm13, %v2736_v26, %v555_v35 }
 0xa7d   :  { %v1036_v38 = vpop.permute.xlu0 %1035  ;;  %v877_v43 = vsel %vm876_vm14, %v2762_v40, %v716_v42  ;;  %v1609_v40 = vld [vmem:[#allocation5 + $0x10] sm:$0xff] }
 0xa7e   :  { %vm1037_vm15 = vcmp.eq.s32.totalorder %v1036_v38, 1 }
 0xa7f   :  { %v1038_v58 = vsel %vm1037_vm15, %v2788_v54, %v877_v43  ;;  %v1610_v54 = vld [vmem:[#allocation5 + $0x18] sm:$0xff] }
 0xa80   :  { %v1199_v51 = vsel %vm1198_vm2, %v2816_v33, %v1038_v58  ;;  %v2316_v55 = vpack.c.bf16 %v1610_v54, %v1609_v40 }
 0xa81   :  { %v1358_v45 = vpop.permute.xlu0 %1357 }
 0xa82   :  { %vm1359_vm3 = vcmp.eq.s32.totalorder %v1358_v45, 1 }
 0xa83   :  { %v1360_v53 = vsel %vm1359_vm3, %v2357_v10, %v1199_v51 }
 0xb3d   :  { %v1510_v37 = vpop.f32.mrb[16].mxu1 }
 0xb3e   :  { %v1511_v39 = vadd.f32 %v2670_v50, %v1510_v37  ;;  %v2131_v41 = vpop.f32.mrb[17].mxu1  ;;  %v2313_v50 = vpack.c.bf16 %v1608_v7, %v1607_v46 }
 0xb40   :  { %2360 = vtanh.f32 %v1511_v39 }
 0xb4a   :  { %v2361_v52 = vpop.eup %2360 }
 0xb4b   :  { %v1521_v26 = vsel %vm1520_vm4, %v2361_v52, %v1360_v53 }
 0xb4c   :  { %2141 = vmatmul.mubr.msk.f32.vlgmr.msra.gmra.mrb[22].mxu0 %vm86_vm1, %v1521_v26 }
 0xb4d   :  { %2314 = vmatpush3.bf16.msra.mxu0 %v2313_v50  ;;  %2151 = vmatprep.mubr.msk.f32.mxu0 %vm2439_vm0, %v2440_v1  ;;  %v1736_v1 = vld [vmem:[%s2882_s10] ss:$0 sm:$0xff] }
 0xb4e   :  { %2315 = vmatprep.subr.bf16.mxu0 %v2438_v0 }
 0xb51   :  { %2317 = vmatpush3.bf16.msra.mxu0 %v2316_v55 }
 0xc1f   :  { %v1602_v48 = vpop.f32.mrb[22].mxu0 }
 0xc20   :  { %v1603_v9 = vadd.f32 %v1734_v56, %v1602_v48  ;;  %v2142_v14 = vpop.f32.mrb[23].mxu0 }
 0xc22   :  { %v1606_v18 = vmax.f32 %v1603_v9, 0.0 }
 0xc24   :  { %2152 = vmatmul.mubr.msk.f32.vlgmr.msra.gmra.mrb[24].mxu0 %vm86_vm1, %v1606_v18 }
 0xcf7   :  { %v1687_v0 = vpop.f32.mrb[24].mxu0 }
 0xcf8   :  { %v1688_v57 = vadd.f32 %v1736_v1, %v1687_v0  ;;  %v2153_v23 = vpop.f32.mrb[25].mxu0 }
 0xcfa   :  { %1691 = vst [vmem:[#allocation7] sm:$0xff] %v1688_v57 }
 0xcfb   :  { %2417 = shalt.err (!%p2414_p6)
}
 0xcfc   :  { %s2418_s15 = scalar_lea.hbm %s2883_s11, 128 }
 0xcfd   :  { %p2419_p7 = scmp.ne.s32.totalorder %s2883_s11, %s2418_s15  ;;  %p2422_p8 = scmp.lt.u32.totalorder %s2418_s15, %s2883_s11 }
 0xcff   :  { %p2424_p9 = pnand %p2422_p8, %p2419_p7 }
 0xd01   :  { %2427 = shalt.err (!%p2424_p9)
}
 0xd02   :  { %1701 = dma.vmem_to_hbm [thread:$0]  %s1699_s2, 128, %s2883_s11, [#allocation4]  }
 0xd03   :  { %2432 = dma.done.wait [#allocation4], 128  }
 0xd04   :  { %2433 = vsyncadd [#allocation4], 4294967168 }
 0xd05   :  { %1705 = vsyncpa [#allocation3], 1 }
 0xd06   :  { %1706 = vsyncpa [#allocation6], 1 }
 0xd07   :  { %1707 = vsyncpa [#allocation4], 1 }

</bundles_post_ra>
